<compile_context>
chip_gen: v7x
topology: tpu7x:2x2x1
jax: 0.10.0
libtpu: 0.0.40
codegen_flags: <defaults>
</compile_context>

<pallas_src>
import jax
import jax.numpy as jnp
from jax.experimental import pallas as pl
from jax.experimental.pallas import tpu as pltpu


def _query_analyzer_kernel(x_ref, w1_ref, b1_ref, w2_ref, b2_ref, o_ref):
    # x_ref:  [TB, L*E]   (lane-dense, mean-pool already folded into w1)
    # w1_ref: [L*E, H]    b1_ref: [1, H]
    # w2_ref: [1, H]      b2_ref: [1, 1]
    # o_ref:  [TB, 1]
    h = jnp.dot(x_ref[...], w1_ref[...], preferred_element_type=jnp.float32)
    h = jnp.maximum(h + b1_ref[...], 0.0)                       # [TB, H]

    # fc2 as VPU mul + lane reduction (avoids an N=1 MXU matmul).
    logit = jnp.sum(h * w2_ref[...], axis=-1, keepdims=True)    # [TB, 1]
    logit = logit + b2_ref[...]
    o_ref[...] = jax.nn.sigmoid(logit).astype(o_ref.dtype)


def query_analyzer(query_embeddings, w1, b1, w2, b2, *, block_b=512):
    """Pallas forward pass of QueryAnalyzer.

    Args:
      query_embeddings: [B, L, E] float32 (bf16 also works; f32 accumulation).
      w1: [E, H], b1: [H], w2: [H, 1], b2: [1]   (weights transposed vs. nn.Linear)
    Returns:
      complexity: [B] float32
    """
    B, L, E = query_embeddings.shape
    H = w1.shape[1]
    LE = L * E

    # Lane-dense flatten; fuse the mean over L into fc1's weight.
    x2d = query_embeddings.reshape(B, LE)
    w1_fused = (jnp.tile(w1, (L, 1)).astype(jnp.float32) /
                jnp.float32(L)).astype(w1.dtype)                 # [L*E, H]
    b1_2d = b1.reshape(1, H)
    w2_row = w2.reshape(1, H)                                    # column -> row
    b2_2d = b2.reshape(1, 1)

    # Batch tile: sublane-aligned, a few hundred KiB per x block.
    TB = min(block_b, B)
    TB = max(8, ((TB + 7) // 8) * 8)
    num_tiles = pl.cdiv(B, TB)
    B_pad = num_tiles * TB
    if B_pad != B:
        x2d = jnp.pad(x2d, ((0, B_pad - B), (0, 0)))

    out = pl.pallas_call(
        _query_analyzer_kernel,
        out_shape=jax.ShapeDtypeStruct((B_pad, 1), jnp.float32),
        grid=(num_tiles,),
        in_specs=[
            pl.BlockSpec((TB, LE), lambda i: (i, 0)),   # x tile (pipelined)
            pl.BlockSpec((LE, H), lambda i: (0, 0)),    # fused fc1 weight (resident)
            pl.BlockSpec((1, H), lambda i: (0, 0)),     # b1
            pl.BlockSpec((1, H), lambda i: (0, 0)),     # w2 row
            pl.BlockSpec((1, 1), lambda i: (0, 0)),     # b2
        ],
        out_specs=pl.BlockSpec((TB, 1), lambda i: (i, 0)),
        compiler_params=pltpu.CompilerParams(
            dimension_semantics=("parallel",)),
    )(x2d, w1_fused, b1_2d, w2_row, b2_2d)

    return out[:B, 0]  # drop pad rows, squeeze(-1) -> [B]


def _reference(query_embeddings, w1, b1, w2, b2):
    pooled = jnp.mean(query_embeddings, axis=1)
    hidden = jax.nn.relu(pooled @ w1 + b1)
    return jax.nn.sigmoid(hidden @ w2 + b2)[:, 0]


if __name__ == "__main__":
    L, E, H = 8, 32, 128

    key = jax.random.PRNGKey(0)
    kx, kw1, kb1, kw2, kb2, kx2 = jax.random.split(key, 6)

    # Deterministic parameter init (mimic nn.Linear's uniform(-1/sqrt(fan_in), +)).
    lim1 = 1.0 / jnp.sqrt(jnp.float32(E))
    w1 = jax.random.uniform(kw1, (E, H), jnp.float32, -lim1, lim1)
    b1 = jax.random.uniform(kb1, (H,), jnp.float32, -lim1, lim1)
    lim2 = 1.0 / jnp.sqrt(jnp.float32(H))
    w2 = jax.random.uniform(kw2, (H, 1), jnp.float32, -lim2, lim2)
    b2 = jax.random.uniform(kb2, (1,), jnp.float32, -lim2, lim2)

    # Small batch (exercises the padded partial-tile path).
    B = 2
    x = jax.random.normal(kx, (B, L, E), dtype=jnp.float32)
    out = query_analyzer(x, w1, b1, w2, b2)
    jax.block_until_ready(out)
    ref = _reference(x, w1, b1, w2, b2)
    assert out.shape == (B,)
    assert jnp.allclose(out, ref, atol=1e-5, rtol=1e-5), (out, ref)

    # Larger batch (exercises the multi-tile pipelined path, B not multiple of TB).
    B2 = 1000
    x2 = jax.random.normal(kx2, (B2, L, E), dtype=jnp.float32)
    out2 = query_analyzer(x2, w1, b1, w2, b2)
    jax.block_until_ready(out2)
    ref2 = _reference(x2, w1, b1, w2, b2)
    assert out2.shape == (B2,)
    assert jnp.allclose(out2, ref2, atol=1e-5, rtol=1e-5)

    print("KERNEL_OK")
</pallas_src>

<mosaic_0001>
module attributes {stable_mosaic.version = 11 : i64} {
  func.func @_query_analyzer_kernel(%arg0: i32, %arg1: memref<8x256xf32, #tpu.memory_space<vmem>>, %arg2: memref<256x128xf32, #tpu.memory_space<vmem>>, %arg3: memref<1x128xf32, #tpu.memory_space<vmem>>, %arg4: memref<1x128xf32, #tpu.memory_space<vmem>>, %arg5: memref<1x1xf32, #tpu.memory_space<vmem>>, %arg6: memref<8x1xf32, #tpu.memory_space<vmem>>) attributes {dimension_semantics = [#tpu.dimension_semantics<parallel>], iteration_bounds = array<i64: 1>, scalar_prefetch = 0 : i64, scratch_operands = 0 : i64, tpu.core_type = #tpu.core_type<tc>, window_params = [{transform_indices = @transform_0, window_bounds = array<i64: 8, 256>}, {pipeline_mode = #tpu.pipeline_mode<synchronous>, transform_indices = @transform_1, window_bounds = array<i64: 256, 128>}, {pipeline_mode = #tpu.pipeline_mode<synchronous>, transform_indices = @transform_2, window_bounds = array<i64: 1, 128>}, {pipeline_mode = #tpu.pipeline_mode<synchronous>, transform_indices = @transform_3, window_bounds = array<i64: 1, 128>}, {pipeline_mode = #tpu.pipeline_mode<synchronous>, transform_indices = @transform_4, window_bounds = array<i64: 1, 1>}, {transform_indices = @transform_5, window_bounds = array<i64: 8, 1>}]} {
    %c0 = arith.constant 0 : index
    %c0_0 = arith.constant 0 : index
    %0 = vector.load %arg1[%c0, %c0_0] : memref<8x256xf32, #tpu.memory_space<vmem>>, vector<8x256xf32>
    %c0_1 = arith.constant 0 : index
    %c0_2 = arith.constant 0 : index
    %1 = vector.load %arg2[%c0_1, %c0_2] : memref<256x128xf32, #tpu.memory_space<vmem>>, vector<256x128xf32>
    %cst = arith.constant dense<0.000000e+00> : vector<8x128xf32>
    %2 = tpu.matmul %0, %1, %cst {dimension_numbers = #tpu.dot_dimension_numbers<[1], [0], [0], [1], [0, 0, 1, 1], [], []>} : vector<8x256xf32>, vector<256x128xf32>, vector<8x128xf32> -> vector<8x128xf32>
    %c0_3 = arith.constant 0 : index
    %c0_4 = arith.constant 0 : index
    %3 = vector.load %arg3[%c0_3, %c0_4] : memref<1x128xf32, #tpu.memory_space<vmem>>, vector<1x128xf32>
    %4 = vector.broadcast %3 : vector<1x128xf32> to vector<8x128xf32>
    %5 = arith.addf %2, %4 : vector<8x128xf32>
    %cst_5 = arith.constant 0.000000e+00 : f32
    %6 = vector.broadcast %cst_5 : f32 to vector<8x128xf32>
    %7 = arith.maximumf %5, %6 : vector<8x128xf32>
    %c0_6 = arith.constant 0 : index
    %c0_7 = arith.constant 0 : index
    %8 = vector.load %arg4[%c0_6, %c0_7] : memref<1x128xf32, #tpu.memory_space<vmem>>, vector<1x128xf32>
    %9 = vector.broadcast %8 : vector<1x128xf32> to vector<8x128xf32>
    %10 = arith.mulf %7, %9 : vector<8x128xf32>
    %cst_8 = arith.constant dense<0.000000e+00> : vector<8xf32>
    %11 = vector.multi_reduction <add>, %10, %cst_8 [1] : vector<8x128xf32> to vector<8xf32>
    %12 = vector.shape_cast %11 : vector<8xf32> to vector<8x1xf32>
    %c0_9 = arith.constant 0 : index
    %c0_10 = arith.constant 0 : index
    %13 = vector.load %arg5[%c0_9, %c0_10] : memref<1x1xf32, #tpu.memory_space<vmem>>, vector<1x1xf32>
    %14 = vector.broadcast %13 : vector<1x1xf32> to vector<8x1xf32>
    %15 = arith.addf %12, %14 : vector<8x1xf32>
    %16 = arith.negf %15 : vector<8x1xf32>
    %17 = math.exp %16 : vector<8x1xf32>
    %cst_11 = arith.constant 1.000000e+00 : f32
    %18 = vector.broadcast %cst_11 : f32 to vector<8x1xf32>
    %19 = arith.addf %18, %17 : vector<8x1xf32>
    %20 = arith.divf %18, %19 : vector<8x1xf32>
    %c0_12 = arith.constant 0 : index
    %c0_13 = arith.constant 0 : index
    %21 = vector.load %arg6[%c0_12, %c0_13] : memref<8x1xf32, #tpu.memory_space<vmem>>, vector<8x1xf32>
    tpu.vector_store %arg6[%c0_12, %c0_13], %20 {strides = array<i32>} : memref<8x1xf32, #tpu.memory_space<vmem>>, vector<8x1xf32>,
    return
  }
  func.func @transform_0(%arg0: i32) -> (i32, i32) {
    %c0_i32 = arith.constant 0 : i32
    %c0_i32_0 = arith.constant 0 : i32
    return %arg0, %c0_i32 : i32, i32
  }
  func.func @transform_1(%arg0: i32) -> (i32, i32) {
    %c0_i32 = arith.constant 0 : i32
    %c0_i32_0 = arith.constant 0 : i32
    %c0_i32_1 = arith.constant 0 : i32
    return %c0_i32, %c0_i32_0 : i32, i32
  }
  func.func @transform_2(%arg0: i32) -> (i32, i32) {
    %c0_i32 = arith.constant 0 : i32
    %c0_i32_0 = arith.constant 0 : i32
    %c0_i32_1 = arith.constant 0 : i32
    return %c0_i32, %c0_i32_0 : i32, i32
  }
  func.func @transform_3(%arg0: i32) -> (i32, i32) {
    %c0_i32 = arith.constant 0 : i32
    %c0_i32_0 = arith.constant 0 : i32
    %c0_i32_1 = arith.constant 0 : i32
    return %c0_i32, %c0_i32_0 : i32, i32
  }
  func.func @transform_4(%arg0: i32) -> (i32, i32) {
    %c0_i32 = arith.constant 0 : i32
    %c0_i32_0 = arith.constant 0 : i32
    %c0_i32_1 = arith.constant 0 : i32
    return %c0_i32, %c0_i32_0 : i32, i32
  }
  func.func @transform_5(%arg0: i32) -> (i32, i32) {
    %c0_i32 = arith.constant 0 : i32
    %c0_i32_0 = arith.constant 0 : i32
    return %arg0, %c0_i32 : i32, i32
  }
}

</mosaic_0001>

<bundles_post_ra>
// kernel: tpu_custom_call.1
= control target key start
LH: loop header
LB: loop body
LE: loop exit
PB: predicated region body
PF: predicated region fallthrough
CT: control target
= control target key end

     0   :  { %s396_s0 = inlined_call_operand.hbm [shape: f32[8,256], index: 0, kind: input, shape index: {}]   ;;  %s397_s1 = inlined_call_operand.hbm [shape: f32[256,128], index: 1, kind: input, shape index: {}]   ;;  %s398_s2 = inlined_call_operand.vmem [shape: f32[1,128], index: 2, kind: input, shape index: {}]   ;;  %s399_s3 = inlined_call_operand.vmem [shape: f32[1,128], index: 3, kind: input, shape index: {}]   ;;  %s400_s4 = inlined_call_operand.<no memory space> [shape: f32[1,1], index: 4, kind: input, shape index: {}]   ;;  %s401_s5 = inlined_call_operand.vmem [shape: f32[8,1], index: 5, kind: output, shape index: {}]  }
   0x1   :  { %v10_v0 = vstv %s400_s4 }
   0x2   :  { %11 = vst [vmem:[#allocation2] sm:$0x1] %v10_v0 }
   0x3   :  { %12 = vsyncpa [#allocation4], 0 }
   0x4   :  { %13 = vsyncpa [#allocation6], 0  ;;  %s319_s20 = smov [#allocation3]   ;;  %s320_s22 = smov [#allocation5]  }
   0x5   :  { %s20_s21 = sshll.u32 %s319_s20, 4  ;;  %s29_s23 = sshll.u32 %s320_s22, 4  ;;  %s21_s21 = int_to_ptr.vmem [resolvable:$true] %s20_s21  ;;  %s356_s23 = int_to_ptr.vmem [resolvable:$true] %s29_s23 }
   0x6   :  { %s271_s26 = scalar_lea.hbm %s396_s0, 256 }
   0x7   :  { %p272_p0 = scmp.ne.s32.totalorder %s396_s0, %s271_s26  ;;  %p275_p1 = scmp.lt.u32.totalorder %s271_s26, %s396_s0 }
   0x9   :  { %p277_p2 = pnand %p275_p1, %p272_p0 }
   0xb   :  { %280 = shalt.err (!%p277_p2)
}
   0xc   :  { %s281_s30 = scalar_lea.vmem %s21_s21, 256  ;;  %p286_p4 = scmp.lt.s32.totalorder %s21_s21, %s21_s21 }
   0xd   :  { %p282_p3 = scmp.ne.s32.totalorder %s21_s21, %s281_s30  ;;  %p287_p5 = scmp.lt.s32.totalorder %s281_s30, %s281_s30 }
   0xf   :  { %p288_p6 = por %p287_p5, %p286_p4 }
  0x11   :  { %p289_p7 = pnand %p288_p6, %p282_p3 }
  0x13   :  { %292 = shalt.err (!%p289_p7)
}
  0x14   :  { %23 = dma.hbm_to_vmem [thread:$0]  %s396_s0, 256, %s21_s21, [#allocation4]  }
  0x15   :  { %s293_s10 = scalar_lea.hbm %s397_s1, 4096 }
  0x16   :  { %p294_p8 = scmp.ne.s32.totalorder %s397_s1, %s293_s10  ;;  %p297_p9 = scmp.lt.u32.totalorder %s293_s10, %s397_s1 }
  0x18   :  { %p299_p10 = pnand %p297_p9, %p294_p8 }
  0x1a   :  { %302 = shalt.err (!%p299_p10)
}
  0x1b   :  { %s303_s15 = scalar_lea.vmem %s356_s23, 4096  ;;  %p308_p12 = scmp.lt.s32.totalorder %s356_s23, %s356_s23 }
  0x1c   :  { %p304_p11 = scmp.ne.s32.totalorder %s356_s23, %s303_s15  ;;  %p309_p13 = scmp.lt.s32.totalorder %s303_s15, %s303_s15 }
  0x1e   :  { %p310_p0 = por %p309_p13, %p308_p12 }
  0x20   :  { %p311_p1 = pnand %p310_p0, %p304_p11 }
  0x22   :  { %314 = shalt.err (!%p311_p1)
}
  0x23   :  { %s321_s0 = smov 128   ;;  %s322_s16 = smov 8  }
  0x24   :  { %35 = dma.hbm_to_vmem [thread:$0]  %s397_s1, 4096, %s356_s23, [#allocation6], %s321_s0, %s321_s0, %s322_s16  }
  0x25   :  { %315 = dma.done.wait [#allocation4], 256  }
  0x26   :  { %316 = vsyncadd [#allocation4], 4294967040 }
  0x27   :  { %317 = dma.done.wait [#allocation6], 4096  }
  0x28   :  { %318 = vsyncadd [#allocation6], 4294963200  ;;  %v66_v1 = vld [vmem:[#allocation5 + $0x80] sm:$0xff]  ;;  %v67_v2 = vld [vmem:[#allocation5 + $0x88] sm:$0xff]  ;;  %vm184_vm0 = vcmask 7168  }
  0x29   :  { %v50_v3 = vld [vmem:[#allocation5] sm:$0xff]  ;;  %v231_v4 = vpack.c.bf16 %v67_v2, %v66_v1  ;;  %v51_v5 = vld [vmem:[#allocation5 + $0x8] sm:$0xff]  ;;  %v68_v6 = vld [vmem:[#allocation5 + $0x90] sm:$0xff] }
  0x2a   :  { %v69_v7 = vld [vmem:[#allocation5 + $0x98] sm:$0xff]  ;;  %v233_v8 = vpack.c.bf16 %v51_v5, %v50_v3  ;;  %v52_v10 = vld [vmem:[#allocation5 + $0x10] sm:$0xff]  ;;  %v70_v12 = vld [vmem:[#allocation5 + $0xa0] sm:$0xff] }
  0x2b   :  { %v235_v9 = vpack.c.bf16 %v69_v7, %v68_v6  ;;  %v53_v11 = vld [vmem:[#allocation5 + $0x18] sm:$0xff]  ;;  %232 = vmatprep.subr.bf16.mxu0 %v231_v4  ;;  %v71_v13 = vld [vmem:[#allocation5 + $0xa8] sm:$0xff]  ;;  %v54_v16 = vld [vmem:[#allocation5 + $0x20] sm:$0xff] }
  0x2c   :  { %234 = vmatpush3.bf16.msra.mxu0 %v233_v8  ;;  %v237_v14 = vpack.c.bf16 %v53_v11, %v52_v10  ;;  %v239_v15 = vpack.c.bf16 %v71_v13, %v70_v12  ;;  %v55_v17 = vld [vmem:[#allocation5 + $0x28] sm:$0xff]  ;;  %v72_v18 = vld [vmem:[#allocation5 + $0xb0] sm:$0xff]  ;;  %v73_v19 = vld [vmem:[#allocation5 + $0xb8] sm:$0xff] }
  0x2d   :  { %236 = vmatprep.subr.bf16.mxu0 %v235_v9  ;;  %v241_v20 = vpack.c.bf16 %v55_v17, %v54_v16  ;;  %v243_v21 = vpack.c.bf16 %v73_v19, %v72_v18  ;;  %v56_v22 = vld [vmem:[#allocation5 + $0x30] sm:$0xff]  ;;  %v57_v23 = vld [vmem:[#allocation5 + $0x38] sm:$0xff]  ;;  %v74_v24 = vld [vmem:[#allocation5 + $0xc0] sm:$0xff] }
  0x2e   :  { %v75_v25 = vld [vmem:[#allocation5 + $0xc8] sm:$0xff]  ;;  %v49_v26 = vld [vmem:[#allocation3 + $0x8] sm:$0xff]  ;;  %v245_v27 = vpack.c.bf16 %v57_v23, %v56_v22  ;;  %v58_v29 = vld [vmem:[#allocation5 + $0x40] sm:$0xff] }
  0x2f   :  { %153 = vmatprep.mubr.f32.mxu0 %v49_v26  ;;  %v247_v28 = vpack.c.bf16 %v75_v25, %v74_v24  ;;  %v59_v30 = vld [vmem:[#allocation5 + $0x48] sm:$0xff]  ;;  %v76_v31 = vld [vmem:[#allocation5 + $0xd0] sm:$0xff]  ;;  %v77_v32 = vld [vmem:[#allocation5 + $0xd8] sm:$0xff] }
  0x30   :  { %238 = vmatpush3.bf16.msra.mxu0 %v237_v14  ;;  %v249_v33 = vpack.c.bf16 %v59_v30, %v58_v29  ;;  %v251_v34 = vpack.c.bf16 %v77_v32, %v76_v31  ;;  %v60_v35 = vld [vmem:[#allocation5 + $0x50] sm:$0xff]  ;;  %v61_v36 = vld [vmem:[#allocation5 + $0x58] sm:$0xff]  ;;  %v78_v37 = vld [vmem:[#allocation5 + $0xe0] sm:$0xff] }
  0x31   :  { %240 = vmatprep.subr.bf16.mxu0 %v239_v15  ;;  %v79_v38 = vld [vmem:[#allocation5 + $0xe8] sm:$0xff]  ;;  %v253_v39 = vpack.c.bf16 %v61_v36, %v60_v35  ;;  %v62_v41 = vld [vmem:[#allocation5 + $0x60] sm:$0xff]  ;;  %v80_v43 = vld [vmem:[#allocation5 + $0xf0] sm:$0xff] }
  0x32   :  { %v255_v40 = vpack.c.bf16 %v79_v38, %v78_v37  ;;  %v63_v42 = vld [vmem:[#allocation5 + $0x68] sm:$0xff]  ;;  %v81_v44 = vld [vmem:[#allocation5 + $0xf8] sm:$0xff]  ;;  %v64_v47 = vld [vmem:[#allocation5 + $0x70] sm:$0xff] }
  0x33   :  { %v257_v45 = vpack.c.bf16 %v63_v42, %v62_v41  ;;  %v259_v46 = vpack.c.bf16 %v81_v44, %v80_v43  ;;  %v65_v48 = vld [vmem:[#allocation5 + $0x78] sm:$0xff]  ;;  %v48_v50 = vld [vmem:[#allocation3] sm:$0xff]  ;;  %v192_v53 = vld [vmem:[%s398_s2] ss:$0 sm:$0xff] }
  0x34   :  { %242 = vmatpush3.bf16.msra.mxu0 %v241_v20  ;;  %v261_v49 = vpack.c.bf16 %v65_v48, %v64_v47  ;;  %v193_v56 = vld [vmem:[%s399_s3] ss:$0 sm:$0xff] }
  0x35   :  { %244 = vmatprep.subr.bf16.mxu0 %v243_v21  ;;  %v194_v59 = vld [vmem:[#allocation2] ss:$0 sm:$0xff] }
  0x38   :  { %246 = vmatpush3.bf16.msra.mxu0 %v245_v27 }
  0x39   :  { %248 = vmatprep.subr.bf16.mxu0 %v247_v28 }
  0x3c   :  { %250 = vmatpush3.bf16.msra.mxu0 %v249_v33 }
  0x3d   :  { %252 = vmatprep.subr.bf16.mxu0 %v251_v34 }
  0x40   :  { %254 = vmatpush3.bf16.msra.mxu0 %v253_v39 }
  0x41   :  { %256 = vmatprep.subr.bf16.mxu0 %v255_v40 }
  0x44   :  { %258 = vmatpush3.bf16.msra.mxu0 %v257_v45 }
  0x45   :  { %260 = vmatprep.subr.bf16.mxu0 %v259_v46 }
  0x48   :  { %262 = vmatpush3.bf16.msra.mxu0 %v261_v49 }
  0x4b   :  { %154 = vmatmul.mubr.f32.vlgmr.msra.gmra.mrb[0].mxu0 %v48_v50 }
 0x11e   :  { %v228_v51 = vpop.f32.mrb[0].mxu0 }
 0x11f   :  { %v229_v52 = vpop.f32.mrb[1].mxu0 }
 0x120   :  { %v230_v54 = vadd.f32 %v229_v52, %v228_v51 }
 0x122   :  { %v156_v55 = vadd.f32 %v230_v54, %v192_v53 }
 0x124   :  { %v159_v57 = vmax.f32 %v156_v55, 0.0 }
 0x126   :  { %v167_v58 = vmul.f32 %v193_v56, %v159_v57 }
 0x128   :  { %168 = vadd.xlane.f32.xlu0 %v167_v58 }
 0x1b5   :  { %v169_v60 = vpop.xlane.xlu0 %168 }
 0x1b6   :  { %v177_v61 = vadd.f32 %v194_v59, %v169_v60 }
 0x1b8   :  { %v195_v62 = vmul.f32 -1.442695, %v177_v61 }
 0x1ba   :  { %267 = vpow2.f32 %v195_v62 }
 0x1c4   :  { %v268_v63 = vpop.eup %267 }
 0x1c5   :  { %v181_v0 = vadd.f32 1.0, %v268_v63 }
 0x1c7   :  { %269 = vrcp.f32 %v181_v0 }
 0x1d1   :  { %v270_v1 = vpop.eup %269 }
 0x1d2   :  { %185 = vst.msk [vmem:[%s401_s5] sm:$0xff] %vm184_vm0, %v270_v1 }
 0x1d3   :  { %190 = vsyncpa [#allocation4], 1 }
 0x1d4   :  { %191 = vsyncpa [#allocation6], 1 }

</bundles_post_ra>
